<compile_context>
chip_gen: v7x
topology: tpu7x:2x2x1
jax: 0.10.0
libtpu: 0.0.40
codegen_flags: <defaults>
</compile_context>

<pallas_src>
import jax
import jax.numpy as jnp
from jax import lax
from jax.experimental import pallas as pl
from jax.experimental.pallas import tpu as pltpu


def _readout_kernel(x_ref, w_ref, o_ref):
    # x_ref: (tile_rows, F) in x.dtype; w_ref: (1, F) in x.dtype;
    # o_ref: (1, tile_rows)  (leading block dim squeezed away).
    y = lax.dot_general(
        w_ref[...], x_ref[...],
        dimension_numbers=(((1,), (1,)), ((), ())),   # contract over F on the MXU
        preferred_element_type=jnp.float32,           # f32 accumulation
    )                                                 # -> (1, tile_rows), lane-dense
    o_ref[...] = y.astype(o_ref.dtype)


def _target_block_bytes() -> int:
    """~8 MiB x-blocks on v6e/v7x, ~4 MiB elsewhere (v5e scoped VMEM default is 16 MiB)."""
    try:
        kind = jax.devices()[0].device_kind.lower()
    except Exception:
        kind = ""
    if "v6" in kind or "v7" in kind:
        return 8 << 20
    return 4 << 20


def _pick_tile_rows(rows: int, feats: int, itemsize: int, target_bytes: int) -> int:
    pack = max(8, 32 // max(1, itemsize))        # sublane pack: 8 f32, 16 bf16, 32 int8
    feats_padded = pl.cdiv(feats, 128) * 128     # lane dim pads to 128 in VMEM
    bytes_per_row = feats_padded * itemsize      # budget with the padded width
    t = max(pack, (target_bytes // bytes_per_row) // pack * pack)
    rows_padded = pl.cdiv(rows, pack) * pack
    t = min(t, rows_padded)
    # If everything fits one block, still split in two so both TensorCores on a
    # v7x megacore get work (costs one extra ~0.35us step on 1-TC chips).
    if t == rows_padded and rows_padded >= 2 * pack:
        t = pl.cdiv(rows_padded // 2, pack) * pack
    return t


def linear_readout(x: jax.Array, w_eff: jax.Array) -> jax.Array:
    """y[n, 0] = sum_f x[n, f] * w_eff[f]   (o3.Linear(irreps_in, "0e") forward).

    x:     [num_nodes, F]
    w_eff: [F] effective weights (zeros on non-scalar channels, e3nn's
           1/sqrt(fan_in) path normalization folded in).
    Returns [num_nodes, 1] in x.dtype.
    """
    assert x.ndim == 2, "expects [num_nodes, features]; reshape outside if needed"
    rows, feats = x.shape
    assert w_eff.shape == (feats,)

    w2 = w_eff.astype(x.dtype).reshape(1, feats)   # MXU does the f32 accumulation

    tile_rows = _pick_tile_rows(rows, feats, x.dtype.itemsize, _target_block_bytes())
    num_blocks = pl.cdiv(rows, tile_rows)

    out = pl.pallas_call(
        _readout_kernel,
        out_shape=jax.ShapeDtypeStruct((num_blocks, 1, tile_rows), x.dtype),
        grid_spec=pltpu.PrefetchScalarGridSpec(
            num_scalar_prefetch=0,
            grid=(num_blocks,),
            in_specs=[
                # x: one row-tile per grid step, full (lane-dense) feature axis.
                pl.BlockSpec((tile_rows, feats), lambda i: (i, 0)),
                # w: tiny, resident in VMEM, same block every step.
                pl.BlockSpec((1, feats), lambda i: (0, 0)),
            ],
            # Lane-dense output block; leading block-index dim squeezed in-kernel.
            out_specs=pl.BlockSpec((None, 1, tile_rows), lambda i: (i, 0, 0)),
        ),
        compiler_params=pltpu.CompilerParams(
            # Row axis is independent -> shard across TensorCores on v7x megacore.
            dimension_semantics=("parallel",),
        ),
    )(x, w2)

    # Layout plumbing: lane-dense slab -> [rows, 1]; padded tail rows discarded.
    return out.reshape(num_blocks * tile_rows)[:rows].reshape(rows, 1)


if __name__ == "__main__":
    key = jax.random.PRNGKey(0)
    k_x, k_w, k_x2 = jax.random.split(key, 3)

    # MACE-style node features: irreps_in = "16x0e + 16x1o"
    #   -> F = 16 scalar channels + 16 * 3 vector components = 64 features/node.
    num_nodes = 32
    n_scalar = 16
    feats = n_scalar + 16 * 3  # 64

    x = jax.random.normal(k_x, (num_nodes, feats), dtype=jnp.float32)

    # o3.Linear(irreps_in, "0e"): only the 0e channels connect to the 0e output;
    # path normalization 1/sqrt(fan_in) folded into the effective weights.
    w_scalar = jax.random.normal(k_w, (n_scalar,), dtype=jnp.float32) / jnp.sqrt(
        jnp.float32(n_scalar)
    )
    w_eff = jnp.zeros((feats,), dtype=jnp.float32).at[:n_scalar].set(w_scalar)

    y = jax.block_until_ready(linear_readout(x, w_eff))

    # Reference: plain-JAX version of the PyTorch forward.
    y_ref = x @ w_eff.reshape(feats, 1)
    assert y.shape == (num_nodes, 1) and y.dtype == x.dtype
    assert jnp.allclose(y, y_ref, atol=1e-5, rtol=1e-5)

    # Uneven row count exercises the padded last block (garbage tail discarded).
    x2 = jax.random.normal(k_x2, (37, feats), dtype=jnp.float32)
    y2 = jax.block_until_ready(linear_readout(x2, w_eff))
    assert jnp.allclose(y2, x2 @ w_eff.reshape(feats, 1), atol=1e-5, rtol=1e-5)

    print("KERNEL_OK")
</pallas_src>

<mosaic_0001>
module attributes {stable_mosaic.version = 11 : i64} {
  func.func @_readout_kernel(%arg0: i32, %arg1: memref<16x64xf32, #tpu.memory_space<vmem>>, %arg2: memref<1x64xf32, #tpu.memory_space<vmem>>, %arg3: memref<1x1x16xf32, #tpu.memory_space<vmem>>) attributes {dimension_semantics = [#tpu.dimension_semantics<parallel>], iteration_bounds = array<i64: 2>, scalar_prefetch = 0 : i64, scratch_operands = 0 : i64, tpu.core_type = #tpu.core_type<tc>, window_params = [{transform_indices = @transform_0, window_bounds = array<i64: 16, 64>}, {pipeline_mode = #tpu.pipeline_mode<synchronous>, transform_indices = @transform_1, window_bounds = array<i64: 1, 64>}, {transform_indices = @transform_2, window_bounds = array<i64: 1, 1, 16>}]} {
    %c0 = arith.constant 0 : index
    %c0_0 = arith.constant 0 : index
    %0 = vector.load %arg2[%c0, %c0_0] : memref<1x64xf32, #tpu.memory_space<vmem>>, vector<1x64xf32>
    %c0_1 = arith.constant 0 : index
    %c0_2 = arith.constant 0 : index
    %1 = vector.load %arg1[%c0_1, %c0_2] : memref<16x64xf32, #tpu.memory_space<vmem>>, vector<16x64xf32>
    %cst = arith.constant dense<0.000000e+00> : vector<1x16xf32>
    %2 = tpu.matmul %0, %1, %cst {dimension_numbers = #tpu.dot_dimension_numbers<[1], [1], [0], [0], [0, 0, 1, 0], [], []>} : vector<1x64xf32>, vector<16x64xf32>, vector<1x16xf32> -> vector<1x16xf32>
    %c0_3 = arith.constant 0 : index
    %c0_4 = arith.constant 0 : index
    %c0_5 = arith.constant 0 : index
    %3 = vector.load %arg3[%c0_3, %c0_4, %c0_5] : memref<1x1x16xf32, #tpu.memory_space<vmem>>, vector<1x1x16xf32>
    %4 = vector.shape_cast %3 : vector<1x1x16xf32> to vector<1x16xf32>
    %5 = vector.shape_cast %2 : vector<1x16xf32> to vector<1x1x16xf32>
    tpu.vector_store %arg3[%c0_3, %c0_4, %c0_5], %5 {strides = array<i32>} : memref<1x1x16xf32, #tpu.memory_space<vmem>>, vector<1x1x16xf32>,
    return
  }
  func.func @transform_0(%arg0: i32) -> (i32, i32) {
    %c0_i32 = arith.constant 0 : i32
    %c0_i32_0 = arith.constant 0 : i32
    return %arg0, %c0_i32 : i32, i32
  }
  func.func @transform_1(%arg0: i32) -> (i32, i32) {
    %c0_i32 = arith.constant 0 : i32
    %c0_i32_0 = arith.constant 0 : i32
    %c0_i32_1 = arith.constant 0 : i32
    return %c0_i32, %c0_i32_0 : i32, i32
  }
  func.func @transform_2(%arg0: i32) -> (i32, i32, i32) {
    %c0_i32 = arith.constant 0 : i32
    %c0_i32_0 = arith.constant 0 : i32
    %c0_i32_1 = arith.constant 0 : i32
    return %arg0, %c0_i32, %c0_i32_0 : i32, i32, i32
  }
}

</mosaic_0001>

<bundles_post_ra>
// kernel: tpu_custom_call.1
= control target key start
LH: loop header
LB: loop body
LE: loop exit
PB: predicated region body
PF: predicated region fallthrough
CT: control target
= control target key end

     0   :  { %7 = vsyncpa [#allocation3], 0  ;;  %s690_s0 = inlined_call_operand.hbm [shape: f32[32,64], index: 0, kind: input, shape index: {}]   ;;  %s691_s1 = inlined_call_operand.vmem [shape: f32[1,64], index: 1, kind: input, shape index: {}]   ;;  %s692_s2 = inlined_call_operand.hbm [shape: f32[2,1,16], index: 2, kind: output, shape index: {}]  }
   0x1   :  { %9 = vsyncpa [#allocation3 + $0x1], 0 }
   0x2   :  { %10 = vsyncpa [#allocation4], 0 }
   0x3   :  { %12 = vsyncpa [#allocation4 + $0x1], 0  ;;  %s526_s9 = smov 0   ;;  %s528_s10 = smov 0  }
   0x4   :  { %s530_s11 = smov 0   ;;  %s532_s12 = smov 0  }
   0x5 LB: > { %s547_s13 = sadd.s32 4294967295, %s502_s12   ;;  %s326_s14 = sadd.s32 4294967294, %s502_s12   ;;  %s502_s12 = sphi %s532_s12, %s705_s12   ;;  %s498_s11 = sphi %s530_s11, %s704_s11   ;;  %s494_s10 = sphi %s528_s10, %s703_s10   ;;  %s490_s9 = sphi %s526_s9, %s702_s9  }
   0x6   : > { %s551_s15 = sadd.s32 1, %s502_s12   ;;  %s25_s16 = sadd.s32 1, %s498_s11 }
   0x7   : > { %s22_s17 = ssub.s32 %s502_s12, %s551_s15  ;;  %p32_p0 = scmp.ne.s32.totalorder %s498_s11, %s494_s10 }
   0x8   : > { %p23_p1 = scmp.eq.s32.totalorder %s22_s17, 0  ;;  %p33_p2 = scmp.eq.s32.totalorder %s502_s12, 0 }
   0x9   : > { %p38_p3 = scmp.ne.s32.totalorder %s494_s10, %s490_s9  ;;  %p39_p4 = scmp.eq.s32.totalorder %s547_s13, 0 }
   0xa   : > { %s563_s18 = scalar_select %p23_p1, %s498_s11, %s25_s16  }
   0xb   : > { %p565_p5 = por %p33_p2, %p32_p0  ;;  %p569_p6 = por %p39_p4, %p38_p3 }
   0xc   : > { %p83_p7 = scmp.eq.s32.totalorder %s547_s13, 1  ;;  %p89_p8 = scmp.eq.s32.totalorder %s326_s14, 1 }
   0xd   : > { %p367_p10 = scmp.lt.s32.totalorder %s502_s12, 2  ;;  %s112_s23 = sand.u32 1, %s498_s11  }
   0xe   : > { %p576_p11 = por %p83_p7, %p32_p0  ;;  %p580_p12 = por %p89_p8, %p38_p3 }
   0xf   : > { %s340_s24 = sshll.u32 %s502_s12, 8  ;;  %s329_s25 = sshll.u32 %s112_s23, 4 }
  0x10   : > { %s696_s21 = scalar_select %p576_p11, 1, 0 }
  0x11   : > { %s697_s22 = scalar_select %p580_p12, 1, 0 }
  0x12   : > { %s589_s28 = scalar_lea.hbm %s690_s0, %s340_s24  ;;  %s116_s29 = scalar_lea.vmem [#allocation2], %s329_s25 }
  0x13   : > { %s123_s30 = sshll.u32 %s116_s29, 4  ;;  %p593_p13 = pnand %p367_p10, %p565_p5  ;;  %s597_s30 = int_to_ptr.vmem [resolvable:$true] %s123_s30 }
  0x14   : > { %s599_s4 = scalar_lea.sflag [#allocation3], %s112_s23  ;;  %s406_s5 = scalar_lea.hbm %s589_s28, 256 }
  0x15   : > { %p407_p0 = scmp.ne.s32.totalorder %s589_s28, %s406_s5  ;;  %p408_p1 = pneg %p593_p13 }
  0x16   : > { %s411_s8 = scalar_lea.hbm %s690_s0, 512  ;;  %p412_p4 = scmp.lt.u32.totalorder %s589_s28, %s690_s0 }
  0x17   : > { %p409_p2 = pnand %p408_p1, %p407_p0  ;;  %p413_p5 = scmp.lt.u32.totalorder %s411_s8, %s406_s5 }
  0x18   : > { %p415_p8 = scmp.lt.u32.totalorder %s406_s5, %s589_s28 }
  0x19   : > { %p410_p3 = pneg %p409_p2  ;;  %p414_p7 = por %p413_p5, %p412_p4 }
  0x1b   : > { %p416_p10 = por %p415_p8, %p414_p7 }
  0x1d   : > { %p417_p9 = pnand %p416_p10, %p410_p3 }
  0x1f   : > { %420 = shalt.err (!%p417_p9)
}
  0x20   : > { %s421_s17 = scalar_lea.vmem %s597_s30, 256  ;;  %s504_s19 = smov [#allocation2]  }
  0x21   : > { %p422_p0 = scmp.ne.s32.totalorder %s597_s30, %s421_s17  ;;  %s426_s23 = sshll.u32 %s504_s19, 4  ;;  %s427_s23 = int_to_ptr.vmem [resolvable:$false] %s426_s23 }
  0x22   : > { %s428_s24 = scalar_lea.vmem %s427_s23, 512  ;;  %p429_p11 = scmp.lt.s32.totalorder %s597_s30, %s427_s23 }
  0x23   : > { %p424_p2 = pnand %p422_p0, %p408_p1  ;;  %p430_p4 = scmp.lt.s32.totalorder %s428_s24, %s421_s17 }
  0x25   : > { %p425_p12 = pneg %p424_p2  ;;  %p431_p5 = por %p430_p4, %p429_p11 }
  0x27   : > { %p432_p7 = pnand %p431_p5, %p425_p12 }
  0x29   : > { %435 = shalt.err (!%p432_p7)
}
  0x2a   : > { %s505_s25 = smov 128   ;;  %s506_s26 = smov 8  }
  0x2b   : > { %362 = dma.hbm_to_vmem [thread:$0]  (!%p593_p13), %s589_s28, 256, %s597_s30, %s599_s4, %s505_s25, %s505_s25, %s506_s26  }
  0x2c   : > { %p332_p9 = scmp.ge.s32.totalorder %s502_s12, 1  ;;  %p131_p1 = scmp.lt.s32.totalorder %s502_s12, 3 }
  0x2e   : > { %p132_p3 = pnand %p332_p9, %p131_p1 }
  0x2f   : > { %s630_s27 = sand.u32 (!%p132_p3), 1, %s494_s10  }
  0x30   : > { %135 = sbr.rel (%p132_p3) target bundleno = 293 (0x125), region = 28  ;;  %s333_s29 = sshll.u32 (!%p132_p3), %s630_s27, 4 }
  0x31   : > { %s138_s5 = scalar_lea.sflag (!%p132_p3), [#allocation3], %s630_s27  ;;  %s141_s6 = scalar_lea.vmem (!%p132_p3), [#allocation2], %s333_s29 }
  0x37   : > { %481 = dma.done.wait (%p569_p6), %s138_s5, 256  }
  0x38   : > { %483 = vsyncadd (%p569_p6), %s138_s5, 4294967040  ;;  %v507_v0 = vmov 0.0|0.0   ;;  %vm508_vm0 = vmmov 0   ;;  %v509_v1 = vmov 0.0   ;;  %vm165_vm1 = vcmask 523264   ;;  %v163_v2 = vld [vmem:[%s141_s6] sm:$0xff] }
  0x39   : > { %351 = vmatprep.subr.bf16.mxu0 %v507_v0  ;;  %348 = vmatprep.mubr.msk.f32.mxu0 %vm508_vm0, %v509_v1  ;;  %v164_v3 = vld [vmem:[%s141_s6 + $0x8] sm:$0xff]  ;;  %vm353_vm2 = vmpackc.low %vm165_vm1, %vm165_vm1  ;;  %v162_v5 = vld [vmem:[%s691_s1] sm:$0x1]  ;;  %s337_s20 = sshll.u32 %s547_s13, 4  ;;  %s160_s3 = scalar_lea.vmem [#allocation5], %s630_s27  ;;  %vm245_vm3 = vcmask 122880  }
  0x3a   : > { %v352_v4 = vpack.c.bf16 %v164_v3, %v163_v2  ;;  %s260_s4 = sshll.u32 %s160_s3, 4  ;;  %s646_s14 = scalar_lea.hbm %s692_s2, %s337_s20  ;;  %s648_s4 = int_to_ptr.vmem [resolvable:$true] %s260_s4 }
  0x3b   : > { %s248_s16 = scalar_lea.sflag [#allocation4], %s630_s27  ;;  %s436_s17 = scalar_lea.vmem %s648_s4, 16 }
  0x3c   : > { %354 = vmatpush3.bf16.xpose.msk.msra.mxu0 %vm353_vm2, %v352_v4  ;;  %p437_p6 = scmp.ne.s32.totalorder %s648_s4, %s436_s17  ;;  %p699_p11 = scmp.ne.s32.totalorder %s696_s21, 0 }
  0x3d   : > { %s510_s13 = smov [#allocation5]  }
  0x3e   : > { %p438_p12 = pnand %p437_p6, %p699_p11  ;;  %s440_s19 = sshll.u32 %s510_s13, 4  ;;  %s441_s19 = int_to_ptr.vmem [resolvable:$false] %s440_s19 }
  0x3f   : > { %s442_s23 = scalar_lea.vmem %s441_s19, 32  ;;  %p443_p8 = scmp.lt.s32.totalorder %s648_s4, %s441_s19 }
  0x40   : > { %p439_p13 = pneg %p438_p12  ;;  %p444_p10 = scmp.lt.s32.totalorder %s442_s23, %s436_s17 }
  0x42   : > { %p445_p0 = por %p444_p10, %p443_p8 }
  0x43   : > { %349 = vmatmul.mubr.msk.f32.vlgmr.msra.gmra.mrb[0].mxu0 %vm165_vm1, %v162_v5 }
  0x44   : > { %p446_p2 = pnand %p445_p0, %p439_p13 }
 0x116   : > { %v241_v6 = vpop.f32.mrb[0].mxu0 }
 0x117   : > { %246 = vst.msk [vmem:[%s160_s3] sm:$0x1] %vm245_vm3, %v241_v6  ;;  %v350_v7 = vpop.f32.mrb[1].mxu0 }
 0x118   : > { %449 = shalt.err (!%p446_p2)
}
 0x119   : > { %s450_s24 = scalar_lea.hbm %s646_s14, 16  ;;  %s454_s27 = scalar_lea.hbm %s692_s2, 32 }
 0x11a   : > { %p451_p4 = scmp.ne.s32.totalorder %s646_s14, %s450_s24  ;;  %p455_p9 = scmp.lt.u32.totalorder %s646_s14, %s692_s2 }
 0x11b   : > { %p456_p1 = scmp.lt.u32.totalorder %s454_s27, %s450_s24  ;;  %p458_p6 = scmp.lt.u32.totalorder %s450_s24, %s646_s14 }
 0x11c   : > { %p452_p5 = pnand %p451_p4, %p699_p11 }
 0x11d   : > { %p457_p3 = por %p456_p1, %p455_p9 }
 0x11e   : > { %p453_p7 = pneg %p452_p5 }
 0x11f   : > { %p459_p12 = por %p458_p6, %p457_p3 }
 0x121   : > { %p460_p13 = pnand %p459_p12, %p453_p7 }
 0x123   : > { %463 = shalt.err (!%p460_p13)
}
 0x124   : > { %357 = dma.vmem_to_hbm [thread:$0]  (%p699_p11), %s648_s4, 16, %s646_s14, %s248_s16  }
 0x125 PF: > { %s272_s6 = sand.u32 1, %s490_s9   ;;  %p700_p8 = scmp.ne.s32.totalorder %s697_s22, 0 }
 0x126   : > { %p701_p10 = scmp.ge.s32.totalorder %s502_s12, 2  ;;  %s273_s28 = scalar_lea.sflag [#allocation4], %s272_s6 }
 0x128   : > { %p364_p0 = pnand %p701_p10, %p700_p8 }
 0x12a   : > { %485 = dma.done.wait (!%p364_p0), %s273_s28, 16  }
 0x12b   : > { %487 = vsyncadd (!%p364_p0), %s273_s28, 4294967280  ;;  %p15_p2 = scmp.ge.s32.totalorder %s551_s15, 4   ;;  %s702_s9 = smov %s494_s10 }
 0x12c   : > { %s703_s10 = smov %s498_s11  ;;  %s704_s11 = smov %s563_s18 }
 0x12d   : > { %s705_s12 = smov %s551_s15  ;;  %17 = sbr.rel (!%p15_p2) target bundleno = 5 (0x5), region = 73 }
 0x134   :  { %277 = vsyncpa [#allocation3], 1 }
 0x135   :  { %279 = vsyncpa [#allocation3 + $0x1], 1 }
 0x136   :  { %280 = vsyncpa [#allocation4], 1 }
 0x137   :  { %282 = vsyncpa [#allocation4 + $0x1], 1 }

</bundles_post_ra>
